<compile_context>
chip_gen: v6e
topology: v6e:2x2x1
jax: 0.10.0
libtpu: 0.0.40
codegen_flags: <defaults>
</compile_context>

<pallas_src>
import jax
import jax.numpy as jnp
from jax import lax
from jax.experimental import pallas as pl
from jax.experimental.pallas import tpu as pltpu

_FOLD = 8  # pairs folded per lane-dense row (8 * R = 128 lanes when R = 16)


def _round_up(x: int, m: int) -> int:
    return ((x + m - 1) // m) * m


def _device_tuning() -> tuple[int, bool]:
    """Returns (default tile_rows, is_multi_tensorcore_chip) for this backend."""
    kind = ""
    try:
        kind = jax.devices()[0].device_kind.lower()
    except Exception:  # no backend visible -> conservative defaults
        pass
    is_v7x = "v7" in kind
    if "v6" in kind or is_v7x:
        # 8192 folded rows: 2 x (4 MiB in + 4 MiB bf16 out) + 128 KiB weight
        # ~= 16.1 MiB double-buffered, under the 32 MiB scoped-VMEM default,
        # and amortizes the ~0.35 us per-grid-step overhead at 1.4-3.2 TB/s.
        return 8192, is_v7x
    # v5e (and unknown/older): 16 MiB scoped-VMEM default -> cap at 4096
    # (~8.1 MiB double-buffered), where per-step overhead is already <10%.
    return 4096, is_v7x


def _attention_mask_kernel(f_ref, w_ref, o_ref):
    # f_ref : (tp, FOLD*R)     lane-dense tile of folded f_ij
    # w_ref : (FOLD*R, FOLD*F) block-diagonal kron(I_FOLD, G.T); constant
    #          index_map -> DMA'd once and kept resident across grid steps
    # o_ref : (tp, FOLD*F)     lane-dense output tile (unmasked wide stores)
    o_ref[...] = jnp.dot(
        f_ref[...], w_ref[...], preferred_element_type=jnp.float32
    ).astype(o_ref.dtype)


def attention_mask_forward(
    f_ij: jax.Array,
    G: jax.Array,
    *,
    tile_rows: int | None = None,
    out_dtype=jnp.bfloat16,
) -> jax.Array:
    """out = f_ij @ G.T computed by a lane-dense Pallas TPU streaming matmul.

    f_ij      : (P, R) float32 RBF features.
    G         : (F, R) float32 parameter.
    tile_rows : tile size in folded rows (1 folded row = FOLD pairs). Default
                is chosen per TPU generation (8192 on v6e/v7x, 4096 on v5e).
    out_dtype : output storage dtype. Default bfloat16 (accumulation stays
                f32 on the MXU; cuts HBM traffic ~33% on this bandwidth-bound
                kernel).  Pass jnp.float32 for exact dtype parity with the
                PyTorch module.
    returns (P, F) array of out_dtype.
    """
    P, R = f_ij.shape
    F, R2 = G.shape
    assert R == R2, "RBF dimension mismatch"

    if P == 0:  # no pairs: avoid a zero-size grid
        return jnp.zeros((0, F), dtype=out_dtype)

    default_tile, is_v7x = _device_tuning()
    if tile_rows is None:
        tile_rows = default_tile

    K = _FOLD * R  # folded contraction dim (128 when R = 16)
    N = _FOLD * F  # folded output lane width (256 when F = 32)

    # Block-diagonal folded weight, built once outside the hot loop:
    #   W[j*R:(j+1)*R, j*F:(j+1)*F] = G.T   for j in range(FOLD)
    # (We deliberately do NOT cast f_ij/W to bf16 here: a wrapper-side cast is
    #  a separate, un-fused HBM pass that cancels the kernel-side read saving.
    #  Convert at the producer if the upstream RBF kernel can emit bf16.)
    W = jnp.kron(jnp.eye(_FOLD, dtype=G.dtype), jnp.transpose(G))  # (K, N)

    # Pad the pair count only to a multiple of FOLD (needed for the lane-fold
    # reshape); the ragged last grid tile is handled by Pallas and the junk
    # rows are discarded by the final [:P] slice.
    # TODO(synk): have the pair-list producer allocate P in multiples of 8 so
    # this pad (an extra HBM pass when it fires) disappears entirely.
    P8 = _round_up(P, _FOLD)
    if P8 != P:
        f_ij = jnp.pad(f_ij, ((0, P8 - P), (0, 0)))
    Pf = P8 // _FOLD  # folded rows

    # Lane fold: (P8, R) -> (Pf, FOLD*R) is a row-major relabeling.
    # TODO(synk): if xprof shows this reshape (or the unfold below) lowering to
    # a real relayout copy, keep activations in the folded 128/256-lane layout
    # across kernel boundaries instead (emit f_fold upstream, consume out_fold
    # downstream) rather than folding/unfolding in this wrapper.
    f_fold = f_ij.reshape(Pf, K)

    # --- tile sizing over folded rows ------------------------------------
    sub = 16 if jnp.dtype(out_dtype).itemsize < 4 else 8  # sublane min tile
    tile_rows = max(sub, _round_up(tile_rows, sub))
    if Pf <= tile_rows:
        if is_v7x and Pf >= 2 * sub:
            # Keep >= 2 grid steps so the "parallel" pairs axis can shard
            # across both TensorCores (v7x only; on single-TC v5e/v6e a forced
            # split just adds per-step overhead).
            tp = _round_up(pl.cdiv(Pf, 2), sub)
        else:
            tp = Pf  # single full tile (full-dim block, any row count allowed)
    else:
        tp = tile_rows
    grid_rows = pl.cdiv(Pf, tp)

    out_fold = pl.pallas_call(
        _attention_mask_kernel,
        out_shape=jax.ShapeDtypeStruct((Pf, N), out_dtype),
        grid=(grid_rows,),
        in_specs=[
            # TODO(synk): only if the profile still shows exposed DMA at grid
            # step boundaries, sweep pipeline_mode=pl.Buffered(3) here.
            pl.BlockSpec((tp, K), lambda i: (i, 0)),  # streaming folded f_ij
            pl.BlockSpec((K, N), lambda i: (0, 0)),   # resident weight
        ],
        out_specs=pl.BlockSpec((tp, N), lambda i: (i, 0)),
        compiler_params=pltpu.CompilerParams(
            dimension_semantics=("parallel",),
        ),
    )(f_fold, W)

    # Un-fold: (Pf, FOLD*F) is bit-identical row-major to (P8, F).
    return out_fold.reshape(P8, F)[:P]


if __name__ == "__main__":
    # Small, module-consistent shapes.
    number_of_pairs = 128
    number_of_radial_basis_functions = 16
    number_of_atom_features = 32

    key = jax.random.PRNGKey(0)
    k_f, k_g = jax.random.split(key)

    # Deterministic "parameter" init (mirrors torch.randn(F, R)).
    G = jax.random.normal(
        k_g,
        (number_of_atom_features, number_of_radial_basis_functions),
        dtype=jnp.float32,
    )
    f_ij = jax.random.normal(
        k_f,
        (number_of_pairs, number_of_radial_basis_functions),
        dtype=jnp.float32,
    )

    # High-precision reference of the PyTorch forward.
    ref = jnp.matmul(f_ij, G.T, precision=lax.Precision.HIGHEST)

    # 1) Default path: bf16 output (bandwidth-optimized), f32 accumulation.
    out = jax.block_until_ready(attention_mask_forward(f_ij, G))
    assert out.shape == (number_of_pairs, number_of_atom_features)
    assert out.dtype == jnp.bfloat16
    assert jnp.allclose(out.astype(jnp.float32), ref, atol=2e-1, rtol=5e-2), \
        "bf16 output mismatch vs reference"

    # 2) f32 output path (exact dtype parity with the PyTorch module).
    out_f32 = jax.block_until_ready(
        attention_mask_forward(f_ij, G, out_dtype=jnp.float32)
    )
    assert out_f32.dtype == jnp.float32
    assert jnp.allclose(out_f32, ref, atol=1e-1, rtol=2e-2), \
        "f32 output mismatch vs reference"

    # 3) Ragged pair count (not a multiple of 8) + forced multi-tile grid to
    #    exercise the partial-last-tile path.
    P2 = 203
    f2 = jax.random.normal(
        jax.random.PRNGKey(1),
        (P2, number_of_radial_basis_functions),
        dtype=jnp.float32,
    )
    ref2 = jnp.matmul(f2, G.T, precision=lax.Precision.HIGHEST)
    out2 = jax.block_until_ready(attention_mask_forward(f2, G, tile_rows=16))
    assert out2.shape == (P2, number_of_atom_features)
    assert jnp.allclose(out2.astype(jnp.float32), ref2, atol=2e-1, rtol=5e-2), \
        "ragged-tile output mismatch vs reference"

    print("KERNEL_OK")
</pallas_src>

<mosaic_0001>
module attributes {stable_mosaic.version = 11 : i64} {
  func.func @_attention_mask_kernel(%arg0: i32, %arg1: memref<16x128xf32, #tpu.memory_space<vmem>>, %arg2: memref<128x256xf32, #tpu.memory_space<vmem>>, %arg3: memref<16x256xbf16, #tpu.memory_space<vmem>>) attributes {dimension_semantics = [#tpu.dimension_semantics<parallel>], iteration_bounds = array<i64: 1>, scalar_prefetch = 0 : i64, scratch_operands = 0 : i64, tpu.core_type = #tpu.core_type<tc>, window_params = [{transform_indices = @transform_0, window_bounds = array<i64: 16, 128>}, {pipeline_mode = #tpu.pipeline_mode<synchronous>, transform_indices = @transform_1, window_bounds = array<i64: 128, 256>}, {transform_indices = @transform_2, window_bounds = array<i64: 16, 256>}]} {
    %c0 = arith.constant 0 : index
    %c0_0 = arith.constant 0 : index
    %0 = vector.load %arg1[%c0, %c0_0] : memref<16x128xf32, #tpu.memory_space<vmem>>, vector<16x128xf32>
    %c0_1 = arith.constant 0 : index
    %c0_2 = arith.constant 0 : index
    %1 = vector.load %arg2[%c0_1, %c0_2] : memref<128x256xf32, #tpu.memory_space<vmem>>, vector<128x256xf32>
    %cst = arith.constant dense<0.000000e+00> : vector<16x256xf32>
    %2 = tpu.matmul %0, %1, %cst {dimension_numbers = #tpu.dot_dimension_numbers<[1], [0], [0], [1], [0, 0, 1, 1], [], []>} : vector<16x128xf32>, vector<128x256xf32>, vector<16x256xf32> -> vector<16x256xf32>
    %3 = arith.truncf %2 : vector<16x256xf32> to vector<16x256xbf16>
    %c0_3 = arith.constant 0 : index
    %c0_4 = arith.constant 0 : index
    %4 = vector.load %arg3[%c0_3, %c0_4] : memref<16x256xbf16, #tpu.memory_space<vmem>>, vector<16x256xbf16>
    tpu.vector_store %arg3[%c0_3, %c0_4], %3 {strides = array<i32>} : memref<16x256xbf16, #tpu.memory_space<vmem>>, vector<16x256xbf16>,
    return
  }
  func.func @transform_0(%arg0: i32) -> (i32, i32) {
    %c0_i32 = arith.constant 0 : i32
    %c0_i32_0 = arith.constant 0 : i32
    return %arg0, %c0_i32 : i32, i32
  }
  func.func @transform_1(%arg0: i32) -> (i32, i32) {
    %c0_i32 = arith.constant 0 : i32
    %c0_i32_0 = arith.constant 0 : i32
    %c0_i32_1 = arith.constant 0 : i32
    return %c0_i32, %c0_i32_0 : i32, i32
  }
  func.func @transform_2(%arg0: i32) -> (i32, i32) {
    %c0_i32 = arith.constant 0 : i32
    %c0_i32_0 = arith.constant 0 : i32
    return %arg0, %c0_i32 : i32, i32
  }
}

</mosaic_0001>

<bundles_post_ra>
// kernel: tpu_custom_call.1
= control target key start
LH: loop header
LB: loop body
LE: loop exit
PB: predicated region body
PF: predicated region fallthrough
CT: control target
= control target key end

     0   :  { %7 = vsyncpa [#allocation3], 0  ;;  %s331_s0 = inlined_call_operand.hbm [shape: f32[16,128], index: 0, kind: input, shape index: {}]   ;;  %s332_s1 = inlined_call_operand.hbm [shape: f32[128,256], index: 1, kind: input, shape index: {}]   ;;  %s333_s2 = inlined_call_operand.hbm [shape: bf16[16,256], index: 2, kind: output, shape index: {}]  }
   0x1   :  { %8 = vsyncpa [#allocation6], 0 }
   0x2   :  { %9 = vsyncpa [#allocation4], 0  ;;  %s293_s9 = smov [#allocation2]  }
   0x3   :  { %s15_s10 = sshll.u32 %s293_s9, 4  ;;  %s16_s10 = int_to_ptr.vmem [resolvable:$true] %s15_s10 }
   0x4   :  { %s235_s11 = scalar_lea.vmem %s16_s10, 256  ;;  %p240_p1 = scmp.lt.s32.totalorder %s16_s10, %s16_s10 }
   0x5   :  { %p236_p0 = scmp.ne.s32.totalorder %s16_s10, %s235_s11  ;;  %p241_p2 = scmp.lt.s32.totalorder %s235_s11, %s235_s11 }
   0x7   :  { %p242_p3 = por %p241_p2, %p240_p1 }
   0x9   :  { %p243_p4 = pnand %p242_p3, %p236_p0 }
   0xb   :  { %246 = shalt.err (!%p243_p4)
}
   0xc   :  { %s294_s12 = smov 128   ;;  %s295_s13 = smov 8  }
   0xd   :  { %21 = dma.hbm_to_vmem [thread:$0]  %s331_s0, 256, %s16_s10, [#allocation3], %s294_s12, %s294_s12, %s295_s13  }
   0xe   :  { %s296_s16 = smov [#allocation5]  }
   0xf   :  { %s27_s17 = sshll.u32 %s296_s16, 4  ;;  %s28_s17 = int_to_ptr.vmem [resolvable:$true] %s27_s17 }
  0x10   :  { %s255_s18 = scalar_lea.vmem %s28_s17, 4096  ;;  %p260_p6 = scmp.lt.s32.totalorder %s28_s17, %s28_s17 }
  0x11   :  { %p256_p5 = scmp.ne.s32.totalorder %s28_s17, %s255_s18  ;;  %p261_p7 = scmp.lt.s32.totalorder %s255_s18, %s255_s18 }
  0x13   :  { %p262_p8 = por %p261_p7, %p260_p6 }
  0x15   :  { %p263_p9 = pnand %p262_p8, %p256_p5 }
  0x17   :  { %266 = shalt.err (!%p263_p9)
}
  0x18   :  { %s297_s19 = smov 256   ;;  %s298_s20 = smov 16  }
  0x19   :  { %33 = dma.hbm_to_vmem [thread:$0]  %s332_s1, 4096, %s28_s17, [#allocation6], %s297_s19, %s297_s19, %s298_s20  }
  0x1a   :  { %287 = dma.done.wait [#allocation3], 256  }
  0x1b   :  { %288 = vsyncadd [#allocation3], 4294967040 }
  0x1c   :  { %289 = dma.done.wait [#allocation6], 4096  }
  0x1d   :  { %290 = vsyncadd [#allocation6], 4294963200  ;;  %v299_v0 = vmov 0.0   ;;  %v73_v1 = vld [vmem:[#allocation5 + $0xf8] sm:$0xff]  ;;  %v72_v2 = vld [vmem:[#allocation5 + $0xf0] sm:$0xff]  ;;  %s300_s0 = smov [#allocation7]  }
  0x1e   :  { %138 = vmatprep.mubr.f32.mxu0 %v299_v0  ;;  %144 = vmatprep.mubr.f32.mxu1 %v299_v0  ;;  %v71_v3 = vld [vmem:[#allocation5 + $0xe8] sm:$0xff]  ;;  %v70_v4 = vld [vmem:[#allocation5 + $0xe0] sm:$0xff]  ;;  %v69_v5 = vld [vmem:[#allocation5 + $0xd8] sm:$0xff]  ;;  %s170_s1 = sshll.u32 %s300_s0, 4  ;;  %s171_s1 = int_to_ptr.vmem [resolvable:$true] %s170_s1 }
  0x1f   :  { %74 = vmatprep.subr.mxu0 %v73_v1  ;;  %187 = vmatprep.subr.mxu1 %v73_v1  ;;  %v68_v6 = vld [vmem:[#allocation5 + $0xd0] sm:$0xff]  ;;  %v67_v7 = vld [vmem:[#allocation5 + $0xc8] sm:$0xff]  ;;  %v66_v8 = vld [vmem:[#allocation5 + $0xc0] sm:$0xff]  ;;  %s267_s23 = scalar_lea.vmem %s171_s1, 256  ;;  %p272_p11 = scmp.lt.s32.totalorder %s171_s1, %s171_s1 }
  0x20   :  { %75 = vmatpush1.msra.mxu0 %v72_v2  ;;  %203 = vmatpush1.msra.mxu1 %v72_v2  ;;  %v65_v9 = vld [vmem:[#allocation5 + $0xb8] sm:$0xff]  ;;  %v64_v10 = vld [vmem:[#allocation5 + $0xb0] sm:$0xff]  ;;  %v63_v11 = vld [vmem:[#allocation5 + $0xa8] sm:$0xff]  ;;  %p268_p10 = scmp.ne.s32.totalorder %s171_s1, %s267_s23  ;;  %p273_p12 = scmp.lt.s32.totalorder %s267_s23, %s267_s23 }
  0x21   :  { %76 = vmatprep.subr.mxu0 %v71_v3  ;;  %188 = vmatprep.subr.mxu1 %v71_v3  ;;  %v62_v12 = vld [vmem:[#allocation5 + $0xa0] sm:$0xff]  ;;  %v61_v13 = vld [vmem:[#allocation5 + $0x98] sm:$0xff]  ;;  %v60_v14 = vld [vmem:[#allocation5 + $0x90] sm:$0xff] }
  0x22   :  { %77 = vmatpush1.msra.mxu0 %v70_v4  ;;  %204 = vmatpush1.msra.mxu1 %v70_v4  ;;  %v59_v15 = vld [vmem:[#allocation5 + $0x88] sm:$0xff]  ;;  %v58_v16 = vld [vmem:[#allocation5 + $0x80] sm:$0xff]  ;;  %v57_v17 = vld [vmem:[#allocation5 + $0x78] sm:$0xff]  ;;  %p274_p13 = por %p273_p12, %p272_p11 }
  0x23   :  { %78 = vmatprep.subr.mxu0 %v69_v5  ;;  %189 = vmatprep.subr.mxu1 %v69_v5  ;;  %v56_v18 = vld [vmem:[#allocation5 + $0x70] sm:$0xff]  ;;  %v55_v19 = vld [vmem:[#allocation5 + $0x68] sm:$0xff]  ;;  %v54_v20 = vld [vmem:[#allocation5 + $0x60] sm:$0xff] }
  0x24   :  { %79 = vmatpush1.msra.mxu0 %v68_v6  ;;  %205 = vmatpush1.msra.mxu1 %v68_v6  ;;  %v53_v21 = vld [vmem:[#allocation5 + $0x58] sm:$0xff]  ;;  %v52_v22 = vld [vmem:[#allocation5 + $0x50] sm:$0xff]  ;;  %v51_v23 = vld [vmem:[#allocation5 + $0x48] sm:$0xff]  ;;  %p275_p0 = pnand %p274_p13, %p268_p10 }
  0x25   :  { %80 = vmatprep.subr.mxu0 %v67_v7  ;;  %190 = vmatprep.subr.mxu1 %v67_v7  ;;  %v50_v24 = vld [vmem:[#allocation5 + $0x40] sm:$0xff]  ;;  %v49_v25 = vld [vmem:[#allocation5 + $0x38] sm:$0xff]  ;;  %v48_v26 = vld [vmem:[#allocation5 + $0x30] sm:$0xff] }
  0x26   :  { %81 = vmatpush1.msra.mxu0 %v66_v8  ;;  %206 = vmatpush1.msra.mxu1 %v66_v8  ;;  %v47_v27 = vld [vmem:[#allocation5 + $0x28] sm:$0xff]  ;;  %v46_v28 = vld [vmem:[#allocation5 + $0x20] sm:$0xff]  ;;  %v45_v29 = vld [vmem:[#allocation5 + $0x18] sm:$0xff] }
  0x27   :  { %82 = vmatprep.subr.mxu0 %v65_v9  ;;  %191 = vmatprep.subr.mxu1 %v65_v9  ;;  %v44_v30 = vld [vmem:[#allocation5 + $0x10] sm:$0xff]  ;;  %v43_v31 = vld [vmem:[#allocation5 + $0x8] sm:$0xff]  ;;  %v42_v32 = vld [vmem:[#allocation5] sm:$0xff] }
  0x28   :  { %83 = vmatpush1.msra.mxu0 %v64_v10  ;;  %207 = vmatpush1.msra.mxu1 %v64_v10  ;;  %v40_v33 = vld [vmem:[#allocation2] sm:$0xff]  ;;  %v41_v34 = vld [vmem:[#allocation2 + $0x8] sm:$0xff] }
  0x29   :  { %84 = vmatprep.subr.mxu0 %v63_v11  ;;  %192 = vmatprep.subr.mxu1 %v63_v11 }
  0x2a   :  { %85 = vmatpush1.msra.mxu0 %v62_v12  ;;  %208 = vmatpush1.msra.mxu1 %v62_v12 }
  0x2b   :  { %86 = vmatprep.subr.mxu0 %v61_v13  ;;  %193 = vmatprep.subr.mxu1 %v61_v13 }
  0x2c   :  { %87 = vmatpush1.msra.mxu0 %v60_v14  ;;  %209 = vmatpush1.msra.mxu1 %v60_v14 }
  0x2d   :  { %88 = vmatprep.subr.mxu0 %v59_v15  ;;  %194 = vmatprep.subr.mxu1 %v59_v15 }
  0x2e   :  { %89 = vmatpush1.msra.mxu0 %v58_v16  ;;  %210 = vmatpush1.msra.mxu1 %v58_v16 }
  0x2f   :  { %90 = vmatprep.subr.mxu0 %v57_v17  ;;  %195 = vmatprep.subr.mxu1 %v57_v17 }
  0x30   :  { %91 = vmatpush1.msra.mxu0 %v56_v18  ;;  %211 = vmatpush1.msra.mxu1 %v56_v18 }
  0x31   :  { %92 = vmatprep.subr.mxu0 %v55_v19  ;;  %196 = vmatprep.subr.mxu1 %v55_v19 }
  0x32   :  { %93 = vmatpush1.msra.mxu0 %v54_v20  ;;  %212 = vmatpush1.msra.mxu1 %v54_v20 }
  0x33   :  { %94 = vmatprep.subr.mxu0 %v53_v21  ;;  %197 = vmatprep.subr.mxu1 %v53_v21 }
  0x34   :  { %95 = vmatpush1.msra.mxu0 %v52_v22  ;;  %213 = vmatpush1.msra.mxu1 %v52_v22 }
  0x35   :  { %96 = vmatprep.subr.mxu0 %v51_v23  ;;  %198 = vmatprep.subr.mxu1 %v51_v23 }
  0x36   :  { %97 = vmatpush1.msra.mxu0 %v50_v24  ;;  %214 = vmatpush1.msra.mxu1 %v50_v24 }
  0x37   :  { %98 = vmatprep.subr.mxu0 %v49_v25  ;;  %199 = vmatprep.subr.mxu1 %v49_v25 }
  0x38   :  { %99 = vmatpush1.msra.mxu0 %v48_v26  ;;  %215 = vmatpush1.msra.mxu1 %v48_v26 }
  0x39   :  { %100 = vmatprep.subr.mxu0 %v47_v27  ;;  %200 = vmatprep.subr.mxu1 %v47_v27 }
  0x3a   :  { %101 = vmatpush1.msra.mxu0 %v46_v28  ;;  %216 = vmatpush1.msra.mxu1 %v46_v28 }
  0x3b   :  { %102 = vmatprep.subr.mxu0 %v45_v29  ;;  %201 = vmatprep.subr.mxu1 %v45_v29 }
  0x3c   :  { %103 = vmatpush1.msra.mxu0 %v44_v30  ;;  %217 = vmatpush1.msra.mxu1 %v44_v30 }
  0x3d   :  { %104 = vmatprep.subr.mxu0 %v43_v31  ;;  %202 = vmatprep.subr.mxu1 %v43_v31 }
  0x3e   :  { %105 = vmatpush1.msra.mxu0 %v42_v32  ;;  %218 = vmatpush1.msra.mxu1 %v42_v32 }
  0x3f   :  { %139 = vmatmul.mubr.f32.vlgmr.msra.gmra.mxu0 %v40_v33  ;;  %145 = vmatmul.mubr.f32.vlgmr.msra.gmra.mxu1 %v41_v34 }
  0xff   :  { %v140_v35 = vpop.f32.mrf.mxu0  ;;  %v146_v36 = vpop.f32.mrf.mxu1 }
 0x101   :  { %v142_v37 = vpop.f32.mrf.mxu0  ;;  %v148_v38 = vpop.f32.mrf.mxu1 }
 0x102   :  { %v185_v39 = vpack.c.bf16 %v142_v37, %v140_v35  ;;  %v186_v40 = vpack.c.bf16 %v148_v38, %v146_v36 }
 0x104   :  { %163 = vst [vmem:[#allocation7] sm:$0xff] %v185_v39  ;;  %164 = vst [vmem:[#allocation7 + $0x8] sm:$0xff] %v186_v40 }
 0x105   :  { %278 = shalt.err (!%p275_p0)
}
 0x106   :  { %176 = dma.vmem_to_hbm [thread:$0]  %s171_s1, 256, %s333_s2, [#allocation4], %s294_s12, %s294_s12, %s295_s13  }
 0x107   :  { %291 = dma.done.wait [#allocation4], 256  }
 0x108   :  { %292 = vsyncadd [#allocation4], 4294967040 }
 0x109   :  { %180 = vsyncpa [#allocation3], 1 }
 0x10a   :  { %181 = vsyncpa [#allocation6], 1 }
 0x10b   :  { %182 = vsyncpa [#allocation4], 1 }

</bundles_post_ra>
